<compile_context>
chip_gen: v5e
topology: v5e:2x2
jax: 0.10.0
libtpu: 0.0.40
codegen_flags: <defaults>
</compile_context>

<pallas_src>
import jax
import jax.numpy as jnp
from jax.experimental import pallas as pl
from jax.experimental.pallas import tpu as pltpu


def _round_up(x, m):
    return ((x + m - 1) // m) * m


def _masked_linear_kernel(x_ref, wt_ref, b_ref, m_ref, o_ref, acc_ref):
    """Computes one (tm, tn) output tile; K is the innermost (reduction) axis."""
    k = pl.program_id(2)

    @pl.when(k == 0)
    def _init():
        acc_ref[...] = jnp.zeros_like(acc_ref)

    # MXU matmul with f32 accumulation into the resident VMEM scratch.
    acc_ref[...] += jnp.dot(x_ref[...], wt_ref[...],
                            preferred_element_type=jnp.float32)

    @pl.when(k == pl.num_programs(2) - 1)
    def _finalize():
        y = acc_ref[...] + b_ref[...]   # (tm, tn) + (1, tn) broadcast
        y = y * m_ref[...]              # (tm, tn) * (1, tn) broadcast
        o_ref[...] = y.astype(o_ref.dtype)


class MaskedLinear:
    """out = (x @ W.T + b) * mask as a tiled Pallas TPU kernel.

    Weight transpose, lane-dense zero-padding and the optional bf16 cast all
    happen ONCE at construction time — the per-call hot path only pads x and
    slices the padded output.
    """

    def __init__(self, weight, bias, mask, *, tm=128, tn=128, tk=256,
                 use_bf16=False):
        out_f, in_f = weight.shape
        self.in_features = int(in_f)
        self.out_features = int(out_f)

        # Lane-dense N / K tiles (multiples of 128), clamped to padded extent.
        self.tn = min(tn, _round_up(out_f, 128))
        self.tk = min(tk, _round_up(in_f, 128))
        self.tm_max = tm
        self.Np = _round_up(out_f, self.tn)
        self.Kp = _round_up(in_f, self.tk)

        w_dtype = jnp.bfloat16 if use_bf16 else weight.dtype
        self._x_cast = jnp.bfloat16 if use_bf16 else None

        # One-time transpose + zero-pad to (Kp, Np).  Padded K rows are zero,
        # so they contribute nothing to the accumulation.
        self.wt = (jnp.zeros((self.Kp, self.Np), w_dtype)
                   .at[:in_f, :out_f].set(weight.T.astype(w_dtype)))
        self.b2 = (jnp.zeros((1, self.Np), jnp.float32)
                   .at[:, :out_f].set(bias.astype(jnp.float32)))
        self.m2 = (jnp.zeros((1, self.Np), jnp.float32)
                   .at[:, :out_f].set(mask.astype(jnp.float32)))

    def __call__(self, x):
        B, in_f = x.shape
        assert in_f == self.in_features, "feature-dim mismatch"
        out_dtype = x.dtype

        tn, tk, Np, Kp = self.tn, self.tk, self.Np, self.Kp
        tm = min(self.tm_max, _round_up(B, 8))   # sublane-aligned M tile
        Bp = _round_up(B, tm)

        if self._x_cast is not None:
            x = x.astype(self._x_cast)
        if (Bp, Kp) != (B, in_f):
            x = jnp.pad(x, ((0, Bp - B), (0, Kp - in_f)))

        grid = (Bp // tm, Np // tn, Kp // tk)

        cost = pl.CostEstimate(
            flops=2 * Bp * Kp * Np,
            transcendentals=0,
            bytes_accessed=(Bp * Kp * x.dtype.itemsize
                            + Kp * Np * self.wt.dtype.itemsize
                            + 2 * Np * 4
                            + Bp * Np * out_dtype.itemsize),
        )

        out = pl.pallas_call(
            _masked_linear_kernel,
            out_shape=jax.ShapeDtypeStruct((Bp, Np), out_dtype),
            grid_spec=pltpu.PrefetchScalarGridSpec(
                num_scalar_prefetch=0,
                grid=grid,
                in_specs=[
                    pl.BlockSpec((tm, tk), lambda i, j, k: (i, k)),   # x
                    pl.BlockSpec((tk, tn), lambda i, j, k: (k, j)),   # W^T
                    pl.BlockSpec((1, tn), lambda i, j, k: (0, j)),    # bias
                    pl.BlockSpec((1, tn), lambda i, j, k: (0, j)),    # mask
                ],
                out_specs=pl.BlockSpec((tm, tn), lambda i, j, k: (i, j)),
                scratch_shapes=[pltpu.VMEM((tm, tn), jnp.float32)],
            ),
            compiler_params=pltpu.CompilerParams(
                dimension_semantics=("parallel", "parallel", "arbitrary")),
            cost_estimate=cost,
        )(x, self.wt, self.b2, self.m2)

        # Slice off the lane/sublane padding before returning.
        return out[:B, :self.out_features]


if __name__ == "__main__":
    key = jax.random.PRNGKey(0)

    def make_case(k, B, IN, OUT):
        kx, kw, kb, km = jax.random.split(k, 4)
        x = jax.random.normal(kx, (B, IN), dtype=jnp.float32)
        bound = 1.0 / (IN ** 0.5)      # mimic nn.Linear's uniform init range
        weight = jax.random.uniform(kw, (OUT, IN), jnp.float32, -bound, bound)
        bias = jax.random.uniform(kb, (OUT,), jnp.float32, -bound, bound)
        mask = (jax.random.uniform(km, (OUT,), jnp.float32) > 0.5).astype(jnp.float32)
        return x, weight, bias, mask

    k1, k2 = jax.random.split(key)

    # Case 1: small shapes consistent with the Linear base (single grid step,
    # output padded to a lane-dense 128-wide block and sliced back).
    x, w, b, m = make_case(k1, 8, 32, 32)
    layer = MaskedLinear(w, b, m)
    out = layer(x)
    jax.block_until_ready(out)
    ref = (x @ w.T + b[None, :]) * m[None, :]
    assert out.shape == ref.shape
    assert jnp.allclose(out, ref, atol=1e-5, rtol=1e-5), "case-1 mismatch vs reference"

    # Case 2: exercises the real (M, N, K) tiled grid + K-axis accumulator.
    x2, w2, b2, m2 = make_case(k2, 256, 512, 384)
    layer2 = MaskedLinear(w2, b2, m2, tm=128, tn=128, tk=256)
    out2 = layer2(x2)
    jax.block_until_ready(out2)
    ref2 = (x2 @ w2.T + b2[None, :]) * m2[None, :]
    assert jnp.allclose(out2, ref2, atol=2e-2, rtol=2e-2), "case-2 mismatch vs reference"

    print("KERNEL_OK")
</pallas_src>

<mosaic_0001>
module attributes {stable_mosaic.version = 11 : i64} {
  func.func @_masked_linear_kernel(%arg0: i32, %arg1: i32, %arg2: i32, %arg3: memref<8x128xf32, #tpu.memory_space<vmem>>, %arg4: memref<128x128xf32, #tpu.memory_space<vmem>>, %arg5: memref<1x128xf32, #tpu.memory_space<vmem>>, %arg6: memref<1x128xf32, #tpu.memory_space<vmem>>, %arg7: memref<8x128xf32, #tpu.memory_space<vmem>>, %arg8: memref<8x128xf32, #tpu.memory_space<vmem>>) attributes {dimension_semantics = [#tpu.dimension_semantics<parallel>, #tpu.dimension_semantics<parallel>, #tpu.dimension_semantics<arbitrary>], iteration_bounds = array<i64: 1, 1, 1>, scalar_prefetch = 0 : i64, scratch_operands = 1 : i64, tpu.core_type = #tpu.core_type<tc>, window_params = [{transform_indices = @transform_0, window_bounds = array<i64: 8, 128>}, {transform_indices = @transform_1, window_bounds = array<i64: 128, 128>}, {transform_indices = @transform_2, window_bounds = array<i64: 1, 128>}, {transform_indices = @transform_3, window_bounds = array<i64: 1, 128>}, {transform_indices = @transform_4, window_bounds = array<i64: 8, 128>}]} {
    %c0_i32 = arith.constant 0 : i32
    %0 = arith.cmpi eq, %arg2, %c0_i32 : i32
    %1 = arith.extui %0 : i1 to i32
    %c0_i32_0 = arith.constant 0 : i32
    %2 = arith.cmpi ne, %1, %c0_i32_0 : i32
    scf.if %2 {
      %cst_10 = arith.constant 0.000000e+00 : f32
      %12 = vector.broadcast %cst_10 : f32 to vector<8x128xf32>
      %c0_11 = arith.constant 0 : index
      %c0_12 = arith.constant 0 : index
      %13 = vector.load %arg8[%c0_11, %c0_12] : memref<8x128xf32, #tpu.memory_space<vmem>>, vector<8x128xf32>
      tpu.vector_store %arg8[%c0_11, %c0_12], %12 {strides = array<i32>} : memref<8x128xf32, #tpu.memory_space<vmem>>, vector<8x128xf32>,
    } else {
    }
    %c0 = arith.constant 0 : index
    %c0_1 = arith.constant 0 : index
    %3 = vector.load %arg8[%c0, %c0_1] : memref<8x128xf32, #tpu.memory_space<vmem>>, vector<8x128xf32>
    %c0_2 = arith.constant 0 : index
    %c0_3 = arith.constant 0 : index
    %4 = vector.load %arg3[%c0_2, %c0_3] : memref<8x128xf32, #tpu.memory_space<vmem>>, vector<8x128xf32>
    %c0_4 = arith.constant 0 : index
    %c0_5 = arith.constant 0 : index
    %5 = vector.load %arg4[%c0_4, %c0_5] : memref<128x128xf32, #tpu.memory_space<vmem>>, vector<128x128xf32>
    %cst = arith.constant dense<0.000000e+00> : vector<8x128xf32>
    %6 = tpu.matmul %4, %5, %cst {dimension_numbers = #tpu.dot_dimension_numbers<[1], [0], [0], [1], [0, 0, 1, 1], [], []>} : vector<8x128xf32>, vector<128x128xf32>, vector<8x128xf32> -> vector<8x128xf32>
    %7 = arith.addf %3, %6 : vector<8x128xf32>
    %c0_6 = arith.constant 0 : index
    %c0_7 = arith.constant 0 : index
    %8 = vector.load %arg8[%c0_6, %c0_7] : memref<8x128xf32, #tpu.memory_space<vmem>>, vector<8x128xf32>
    tpu.vector_store %arg8[%c0_6, %c0_7], %7 {strides = array<i32>} : memref<8x128xf32, #tpu.memory_space<vmem>>, vector<8x128xf32>,
    %c0_i32_8 = arith.constant 0 : i32
    %9 = arith.cmpi eq, %arg2, %c0_i32_8 : i32
    %10 = arith.extui %9 : i1 to i32
    %c0_i32_9 = arith.constant 0 : i32
    %11 = arith.cmpi ne, %10, %c0_i32_9 : i32
    scf.if %11 {
      %c0_10 = arith.constant 0 : index
      %c0_11 = arith.constant 0 : index
      %12 = vector.load %arg8[%c0_10, %c0_11] : memref<8x128xf32, #tpu.memory_space<vmem>>, vector<8x128xf32>
      %c0_12 = arith.constant 0 : index
      %c0_13 = arith.constant 0 : index
      %13 = vector.load %arg5[%c0_12, %c0_13] : memref<1x128xf32, #tpu.memory_space<vmem>>, vector<1x128xf32>
      %14 = vector.broadcast %13 : vector<1x128xf32> to vector<8x128xf32>
      %15 = arith.addf %12, %14 : vector<8x128xf32>
      %c0_14 = arith.constant 0 : index
      %c0_15 = arith.constant 0 : index
      %16 = vector.load %arg6[%c0_14, %c0_15] : memref<1x128xf32, #tpu.memory_space<vmem>>, vector<1x128xf32>
      %17 = vector.broadcast %16 : vector<1x128xf32> to vector<8x128xf32>
      %18 = arith.mulf %15, %17 : vector<8x128xf32>
      %c0_16 = arith.constant 0 : index
      %c0_17 = arith.constant 0 : index
      %19 = vector.load %arg7[%c0_16, %c0_17] : memref<8x128xf32, #tpu.memory_space<vmem>>, vector<8x128xf32>
      tpu.vector_store %arg7[%c0_16, %c0_17], %18 {strides = array<i32>} : memref<8x128xf32, #tpu.memory_space<vmem>>, vector<8x128xf32>,
    } else {
    }
    return
  }
  func.func @transform_0(%arg0: i32, %arg1: i32, %arg2: i32) -> (i32, i32) {
    %c0_i32 = arith.constant 0 : i32
    return %arg0, %arg2 : i32, i32
  }
  func.func @transform_1(%arg0: i32, %arg1: i32, %arg2: i32) -> (i32, i32) {
    %c0_i32 = arith.constant 0 : i32
    return %arg2, %arg1 : i32, i32
  }
  func.func @transform_2(%arg0: i32, %arg1: i32, %arg2: i32) -> (i32, i32) {
    %c0_i32 = arith.constant 0 : i32
    %c0_i32_0 = arith.constant 0 : i32
    return %c0_i32, %arg1 : i32, i32
  }
  func.func @transform_3(%arg0: i32, %arg1: i32, %arg2: i32) -> (i32, i32) {
    %c0_i32 = arith.constant 0 : i32
    %c0_i32_0 = arith.constant 0 : i32
    return %c0_i32, %arg1 : i32, i32
  }
  func.func @transform_4(%arg0: i32, %arg1: i32, %arg2: i32) -> (i32, i32) {
    %c0_i32 = arith.constant 0 : i32
    return %arg0, %arg1 : i32, i32
  }
}

</mosaic_0001>

<bundles_post_ra>
// kernel: tpu_custom_call.1
= control target key start
LH: loop header
LB: loop body
LE: loop exit
PB: predicated region body
PF: predicated region fallthrough
CT: control target
= control target key end

     0   :  { %9 = vsyncpa [#allocation4], 0  ;;  %s256_s0 = inlined_call_operand.hbm [shape: f32[8,128], index: 0, kind: input, shape index: {}]   ;;  %s257_s1 = inlined_call_operand.hbm [shape: f32[128,128], index: 1, kind: input, shape index: {}]   ;;  %s258_s2 = inlined_call_operand.vmem [shape: f32[1,128], index: 2, kind: input, shape index: {}]   ;;  %s259_s3 = inlined_call_operand.vmem [shape: f32[1,128], index: 3, kind: input, shape index: {}]   ;;  %s260_s4 = inlined_call_operand.hbm [shape: f32[8,128], index: 4, kind: output, shape index: {}]  }
   0x1   :  { %10 = vsyncpa [#allocation7], 0 }
   0x2   :  { %11 = vsyncpa [#allocation5], 0  ;;  %s17_s17 = sshll.u32 %s256_s0, 4  ;;  %s211_s18 = smov [#allocation3]   ;;  %s18_s17 = int_to_ptr.hbm [resolvable:$true] %s17_s17 }
   0x3   :  { %s19_s19 = sshll.u32 %s211_s18, 4  ;;  %s27_s22 = sshll.u32 %s257_s1, 4  ;;  %s20_s19 = int_to_ptr.vmem [resolvable:$true] %s19_s19  ;;  %s28_s22 = int_to_ptr.hbm [resolvable:$true] %s27_s22 }
   0x4   :  { %22 = dma.hbm_to_vmem [thread:$0]  %s18_s17, 128, %s20_s19, [#allocation4]  }
   0x5   :  { %s212_s23 = smov [#allocation6]   ;;  %s213_s25 = smov 128  }
   0x6   :  { %s29_s24 = sshll.u32 %s212_s23, 4  ;;  %s214_s26 = smov 8   ;;  %s30_s24 = int_to_ptr.vmem [resolvable:$true] %s29_s24 }
   0x7   :  { %35 = dma.hbm_to_vmem [thread:$0]  %s28_s22, 2048, %s30_s24, [#allocation7], %s213_s25, %s213_s25, %s214_s26  }
   0x8   :  { %205 = dma.done.wait [#allocation4], 128  }
   0x9   :  { %206 = vsyncadd [#allocation4], 4294967168 }
   0xa   :  { %207 = dma.done.wait [#allocation7], 2048  }
   0xb   :  { %208 = vsyncadd [#allocation7], 4294965248  ;;  %v70_v0 = vld [vmem:[#allocation6 + $0x78] sm:$0xff]  ;;  %v69_v1 = vld [vmem:[#allocation6 + $0x70] sm:$0xff]  ;;  %s215_s29 = smov [#allocation8]   ;;  %s115_s7 = sshll.u32 %s260_s4, 4  ;;  %s116_s7 = int_to_ptr.hbm [resolvable:$true] %s115_s7 }
   0xc   :  { %71 = vmatpush.msra.mxu0 %v70_v0  ;;  %v68_v2 = vld [vmem:[#allocation6 + $0x68] sm:$0xff]  ;;  %v67_v3 = vld [vmem:[#allocation6 + $0x60] sm:$0xff]  ;;  %v66_v4 = vld [vmem:[#allocation6 + $0x58] sm:$0xff]  ;;  %s113_s30 = sshll.u32 %s215_s29, 4  ;;  %s114_s30 = int_to_ptr.vmem [resolvable:$true] %s113_s30 }
   0xd   :  { %v65_v5 = vld [vmem:[#allocation6 + $0x50] sm:$0xff]  ;;  %v64_v6 = vld [vmem:[#allocation6 + $0x48] sm:$0xff]  ;;  %v63_v7 = vld [vmem:[#allocation6 + $0x40] sm:$0xff] }
   0xe   :  { %72 = vmatpush.msra.mxu0 %v69_v1  ;;  %v62_v8 = vld [vmem:[#allocation6 + $0x38] sm:$0xff]  ;;  %v61_v9 = vld [vmem:[#allocation6 + $0x30] sm:$0xff]  ;;  %v60_v10 = vld [vmem:[#allocation6 + $0x28] sm:$0xff] }
   0xf   :  { %v59_v11 = vld [vmem:[#allocation6 + $0x20] sm:$0xff]  ;;  %v58_v12 = vld [vmem:[#allocation6 + $0x18] sm:$0xff]  ;;  %v57_v13 = vld [vmem:[#allocation6 + $0x10] sm:$0xff] }
  0x10   :  { %73 = vmatpush.msra.mxu0 %v68_v2  ;;  %v56_v14 = vld [vmem:[#allocation6 + $0x8] sm:$0xff]  ;;  %v55_v15 = vld [vmem:[#allocation6] sm:$0xff]  ;;  %v54_v16 = vld [vmem:[#allocation3] sm:$0xff] }
  0x11   :  { %v131_v17 = vld [vmem:[%s258_s2] ss:$0 sm:$0xff] }
  0x12   :  { %74 = vmatpush.msra.mxu0 %v67_v3  ;;  %v132_v18 = vld [vmem:[%s259_s3] ss:$0 sm:$0xff] }
  0x14   :  { %75 = vmatpush.msra.mxu0 %v66_v4 }
  0x16   :  { %76 = vmatpush.msra.mxu0 %v65_v5 }
  0x18   :  { %77 = vmatpush.msra.mxu0 %v64_v6 }
  0x1a   :  { %78 = vmatpush.msra.mxu0 %v63_v7 }
  0x1c   :  { %79 = vmatpush.msra.mxu0 %v62_v8 }
  0x1e   :  { %80 = vmatpush.msra.mxu0 %v61_v9 }
  0x20   :  { %81 = vmatpush.msra.mxu0 %v60_v10 }
  0x22   :  { %82 = vmatpush.msra.mxu0 %v59_v11 }
  0x24   :  { %83 = vmatpush.msra.mxu0 %v58_v12 }
  0x26   :  { %84 = vmatpush.msra.mxu0 %v57_v13 }
  0x28   :  { %85 = vmatpush.msra.mxu0 %v56_v14 }
  0x2a   :  { %86 = vmatpush.msra.mxu0 %v55_v15 }
  0x2b   :  { %87 = vmatmul.f32.vlgmr.msra.gmra.mxu0 %v54_v16 }
  0xa8   :  { %v88_v19 = vpop.f32.mrf.mxu0 }
  0xa9   :  { %v101_v20 = vadd.f32 %v131_v17, %v88_v19 }
  0xab   :  { %v106_v21 = vmul.f32 %v132_v18, %v101_v20 }
  0xad   :  { %107 = vst [vmem:[#allocation8] sm:$0xff] %v106_v21 }
  0xae   :  { %118 = dma.vmem_to_hbm [thread:$0]  %s114_s30, 128, %s116_s7, [#allocation5]  }
  0xaf   :  { %209 = dma.done.wait [#allocation5], 128  }
  0xb0   :  { %210 = vsyncadd [#allocation5], 4294967168 }
  0xb1   :  { %123 = vsyncpa [#allocation4], 1 }
  0xb2   :  { %124 = vsyncpa [#allocation7], 1 }
  0xb3   :  { %125 = vsyncpa [#allocation5], 1 }

</bundles_post_ra>
